<compile_context>
chip_gen: v7x
topology: tpu7x:2x2x1
jax: 0.10.0
libtpu: 0.0.40
codegen_flags: <defaults>
</compile_context>

<pallas_src>
import math

import jax
import jax.numpy as jnp
from jax.experimental import pallas as pl
from jax.experimental.pallas import tpu as pltpu


# -----------------------------------------------------------------------------
# Fused halo-blocked conv3d kernel: one (batch, output-depth) slice per step.
# -----------------------------------------------------------------------------
def _conv_band_kernel(x_ref, band_ref, o_ref):
    """x_ref:    (1, D, H, W*Cin)         bf16  full volume of this batch (resident)
       band_ref: (Kd, Kh, W*Cin, Wo*Cout) bf16  banded weights (resident)
       o_ref:    (1, 1, Ho, Wo*Cout)      f32
    """
    od = pl.program_id(1)
    kd_n, kh_n, _, wo_cout = band_ref.shape
    ho = o_ref.shape[2]

    acc = jnp.zeros((ho, wo_cout), jnp.float32)
    # Static unroll: Kd*Kh small MXU dots; the W-axis window + Cin contraction
    # are already folded into the banded weight matrix, so no in-kernel
    # patch-matrix assembly is needed.
    for kd in range(kd_n):
        for kh in range(kh_n):
            rows = x_ref[0, od + kd, pl.ds(kh, ho), :]          # (Ho, W*Cin)
            acc = acc + jnp.dot(rows, band_ref[kd, kh],
                                preferred_element_type=jnp.float32)
    o_ref[0, 0] = acc


def _build_band_weights(k, W, Wo):
    """(Cout, Cin, Kd, Kh, Kw) -> (Kd, Kh, W*Cin, Wo*Cout) banded matrix with

       band[kd, kh, w*Cin + ci, ow*Cout + co] = k[co, ci, kd, kh, w - ow]
         if 0 <= w - ow < Kw else 0

    so the W-axis sliding window plus the Cin contraction become one dense
    matmul per (kd, kh).  Built once from the tiny weight tensor in XLA.
    """
    Cout, Cin, Kd, Kh, Kw = k.shape
    w5 = jnp.transpose(k, (2, 3, 4, 1, 0))                      # (Kd,Kh,Kw,Cin,Cout)
    wi = jnp.arange(W)[:, None]                                 # (W, 1)
    ow = jnp.arange(Wo)[None, :]                                # (1, Wo)
    kw_idx = wi - ow                                            # (W, Wo)
    valid = (kw_idx >= 0) & (kw_idx < Kw)
    band = w5[:, :, jnp.clip(kw_idx, 0, Kw - 1)]                # (Kd,Kh,W,Wo,Cin,Cout)
    band = jnp.where(valid[None, None, :, :, None, None], band, 0.0)
    band = jnp.transpose(band, (0, 1, 2, 4, 3, 5))              # (Kd,Kh,W,Cin,Wo,Cout)
    return band.reshape(Kd, Kh, W * Cin, Wo * Cout)


def convolution_forward(features, k):
    """features: (N, Cin, D, H, W); k: (Cout, Cin, Kd, Kh, Kw) -> (N, Cout, Do, Ho, Wo)."""
    N, Cin, D, H, W = features.shape
    Cout, _, Kd, Kh, Kw = k.shape
    Do, Ho, Wo = D - Kd + 1, H - Kh + 1, W - Kw + 1
    WC, WoC = W * Cin, Wo * Cout

    # Layout plumbing: a single cheap pass over the (small) input, no patch
    # matrix.  NCDHW -> (N, D, H, W*Cin), bf16.
    x2 = jnp.transpose(features, (0, 2, 3, 4, 1)).reshape(N, D, H, WC)
    x2 = x2.astype(jnp.bfloat16)
    band = _build_band_weights(k, W, Wo).astype(jnp.bfloat16)

    # Explicit VMEM budget: 2x (double-buffer) each operand block + headroom.
    x_blk = D * H * WC * 2
    band_blk = Kd * Kh * WC * WoC * 2
    o_blk = Ho * WoC * 4
    need = 2 * (x_blk + band_blk + o_blk)
    vmem_limit = int(min(max(2 * need, 32 * 1024 * 1024), 48 * 1024 * 1024))
    # TODO(synk): for very large volumes (per-batch D*H*W*Cin block or the
    # banded weights approaching VMEM), window the depth axis / tile Wo instead
    # of keeping full-extent blocks resident.

    out = pl.pallas_call(
        _conv_band_kernel,
        out_shape=jax.ShapeDtypeStruct((N, Do, Ho, WoC), jnp.float32),
        grid_spec=pltpu.PrefetchScalarGridSpec(
            num_scalar_prefetch=0,
            grid=(N, Do),
            in_specs=[
                # Full per-batch volume; index_map ignores `od`, so the block
                # stays resident in VMEM across the whole depth loop and is
                # re-DMA'd only when the batch index changes.
                pl.BlockSpec((1, D, H, WC), lambda n, od: (n, 0, 0, 0)),
                # Banded weights: one constant block, resident for the kernel.
                pl.BlockSpec((Kd, Kh, WC, WoC), lambda n, od: (0, 0, 0, 0)),
            ],
            out_specs=pl.BlockSpec((1, 1, Ho, WoC), lambda n, od: (n, od, 0, 0)),
        ),
        compiler_params=pltpu.CompilerParams(
            dimension_semantics=("parallel", "parallel"),
            vmem_limit_bytes=vmem_limit,
        ),
    )(x2, band)

    # Only the small OUTPUT is rearranged back to NCDHW.
    out = out.reshape(N, Do, Ho, Wo, Cout)
    return jnp.transpose(out, (0, 4, 1, 2, 3))


# -----------------------------------------------------------------------------
# e3nn-style kernel-weight generation (plain JAX setup, deterministic weights)
# -----------------------------------------------------------------------------
def _rescaled_relu(x):
    # e3nn rescaled_act.relu: relu scaled so E[act(z)^2] = 1 for z ~ N(0,1)
    return jax.nn.relu(x) * math.sqrt(2.0)


def _init_fc_weights(key, d_in, d_out, h, L):
    dims = [d_in] + [h] * L + [d_out]
    ws = []
    for i in range(len(dims) - 1):
        key, sub = jax.random.split(key)
        ws.append(jax.random.normal(sub, (dims[i + 1], dims[i]), jnp.float32))
    return ws


def _fc_forward(ws, x):
    # e3nn FC: x @ W.T / sqrt(fan_in), rescaled relu between layers, no biases
    for i, Wm in enumerate(ws):
        x = x @ (Wm.T / math.sqrt(Wm.shape[1]))
        if i < len(ws) - 1:
            x = _rescaled_relu(x)
    return x


def build_convolution_weight(key, size, c_in, c_out):
    """Build k of shape (C_out, C_in, size, size, size) like Convolution.forward does.

    Rs_in = [(c_in, 0)], Rs_out = [(c_out, 0)] (scalar irreps).
    """
    # TODO(synk): only scalar (l=0) irreps are reproduced; the spherical-harmonic /
    # Clebsch-Gordan coupling and exact 'component' normalization constants of the
    # full e3nn Kernel for l>0 paths have no clean equivalent here.
    number_of_basis = (size + 1) // 2
    xs = jnp.linspace(-1.0, 1.0, size)
    gx, gy, gz = jnp.meshgrid(xs, xs, xs, indexing="ij")
    r = jnp.stack([gx, gy, gz], axis=-1)                        # (size, size, size, 3)
    radius = jnp.sqrt(jnp.sum(r * r, axis=-1)).reshape(-1)      # (size^3,)

    # CosineBasisModel basis: cos^2(pi/2 * (r - r_i)/step) on |r - r_i| < step
    radii = jnp.linspace(0.0, 1.0, number_of_basis)
    step = radii[1] - radii[0]
    diff = (radius[:, None] - radii[None, :]) / step
    basis = jnp.where(jnp.abs(diff) < 1.0,
                      jnp.cos(0.5 * jnp.pi * diff) ** 2,
                      0.0).astype(jnp.float32)                  # (size^3, nbasis)

    ws = _init_fc_weights(key, number_of_basis, c_out * c_in, h=50, L=3)
    R = _fc_forward(ws, basis)                                  # (size^3, c_out*c_in)

    k = R.reshape(size, size, size, c_out, c_in)                # (x, y, z, i, j)
    k = jnp.einsum("xyzij->ijxyz", k)                           # (c_out, c_in, x, y, z)
    k = k * (2.0 / (size ** 3) ** 0.5)                          # k.mul_(2 / k[0,0].numel()**0.5)
    return k


if __name__ == "__main__":
    key = jax.random.PRNGKey(0)
    k_feat, k_w = jax.random.split(key)

    N, C_in, C_out = 2, 4, 8
    S = 12          # input spatial size (D = H = W)
    size = 5        # conv kernel size -> output spatial = 8

    features = jax.random.normal(k_feat, (N, C_in, S, S, S), jnp.float32)
    k = build_convolution_weight(k_w, size, C_in, C_out)        # (C_out, C_in, 5, 5, 5)

    conv = jax.jit(convolution_forward)
    out = jax.block_until_ready(conv(features, k))

    dn = ("NCDHW", "OIDHW", "NCDHW")
    # Tight check: same bf16-quantized operands, high-precision XLA conv
    # (validates the kernel math / band construction / indexing exactly).
    ref_match = jax.lax.conv_general_dilated(
        features.astype(jnp.bfloat16).astype(jnp.float32),
        k.astype(jnp.bfloat16).astype(jnp.float32),
        window_strides=(1, 1, 1), padding="VALID", dimension_numbers=dn,
        precision=jax.lax.Precision.HIGHEST)
    # Loose check: unquantized f32 reference (bounds the bf16-cast effect).
    ref_full = jax.lax.conv_general_dilated(
        features, k, window_strides=(1, 1, 1), padding="VALID",
        dimension_numbers=dn, precision=jax.lax.Precision.HIGHEST)

    expect = (N, C_out, S - size + 1, S - size + 1, S - size + 1)
    assert out.shape == ref_full.shape == expect
    assert jnp.allclose(out, ref_match, atol=1e-2, rtol=1e-2)
    assert jnp.allclose(out, ref_full, atol=1e-1, rtol=5e-2)

    print("KERNEL_OK")
</pallas_src>

<mosaic_0001>
module attributes {stable_mosaic.version = 11 : i64} {
  func.func @_conv_band_kernel(%arg0: i32, %arg1: i32, %arg2: memref<1x12x12x48xbf16, #tpu.memory_space<vmem>>, %arg3: memref<5x5x48x64xbf16, #tpu.memory_space<vmem>>, %arg4: memref<1x1x8x64xf32, #tpu.memory_space<vmem>>) attributes {dimension_semantics = [#tpu.dimension_semantics<parallel>, #tpu.dimension_semantics<parallel>], iteration_bounds = array<i64: 2, 8>, scalar_prefetch = 0 : i64, scratch_operands = 0 : i64, tpu.core_type = #tpu.core_type<tc>, window_params = [{transform_indices = @transform_0, window_bounds = array<i64: 1, 12, 12, 48>}, {pipeline_mode = #tpu.pipeline_mode<synchronous>, transform_indices = @transform_1, window_bounds = array<i64: 5, 5, 48, 64>}, {transform_indices = @transform_2, window_bounds = array<i64: 1, 1, 8, 64>}]} {
    %cst = arith.constant 0.000000e+00 : f32
    %0 = vector.broadcast %cst : f32 to vector<8x64xf32>
    %c0_i32 = arith.constant 0 : i32
    %1 = arith.addi %arg1, %c0_i32 : i32
    %c0 = arith.constant 0 : index
    %2 = arith.index_cast %1 : i32 to index
    %c0_0 = arith.constant 0 : index
    %c0_1 = arith.constant 0 : index
    %3 = vector.load %arg2[%c0, %2, %c0_0, %c0_1] : memref<1x12x12x48xbf16, #tpu.memory_space<vmem>>, vector<1x1x8x48xbf16>
    %4 = vector.shape_cast %3 : vector<1x1x8x48xbf16> to vector<8x48xbf16>
    %c0_2 = arith.constant 0 : index
    %c0_3 = arith.constant 0 : index
    %c0_4 = arith.constant 0 : index
    %c0_5 = arith.constant 0 : index
    %5 = vector.load %arg3[%c0_2, %c0_3, %c0_4, %c0_5] : memref<5x5x48x64xbf16, #tpu.memory_space<vmem>>, vector<1x1x48x64xbf16>
    %6 = vector.shape_cast %5 : vector<1x1x48x64xbf16> to vector<48x64xbf16>
    %cst_6 = arith.constant dense<0.000000e+00> : vector<8x64xf32>
    %7 = tpu.matmul %4, %6, %cst_6 {dimension_numbers = #tpu.dot_dimension_numbers<[1], [0], [0], [1], [0, 0, 1, 1], [], []>} : vector<8x48xbf16>, vector<48x64xbf16>, vector<8x64xf32> -> vector<8x64xf32>
    %8 = arith.addf %0, %7 : vector<8x64xf32>
    %c0_i32_7 = arith.constant 0 : i32
    %9 = arith.addi %arg1, %c0_i32_7 : i32
    %c0_8 = arith.constant 0 : index
    %10 = arith.index_cast %9 : i32 to index
    %c1 = arith.constant 1 : index
    %c0_9 = arith.constant 0 : index
    %11 = vector.load %arg2[%c0_8, %10, %c1, %c0_9] : memref<1x12x12x48xbf16, #tpu.memory_space<vmem>>, vector<1x1x8x48xbf16>
    %12 = vector.shape_cast %11 : vector<1x1x8x48xbf16> to vector<8x48xbf16>
    %c0_10 = arith.constant 0 : index
    %c1_11 = arith.constant 1 : index
    %c0_12 = arith.constant 0 : index
    %c0_13 = arith.constant 0 : index
    %13 = vector.load %arg3[%c0_10, %c1_11, %c0_12, %c0_13] : memref<5x5x48x64xbf16, #tpu.memory_space<vmem>>, vector<1x1x48x64xbf16>
    %14 = vector.shape_cast %13 : vector<1x1x48x64xbf16> to vector<48x64xbf16>
    %cst_14 = arith.constant dense<0.000000e+00> : vector<8x64xf32>
    %15 = tpu.matmul %12, %14, %cst_14 {dimension_numbers = #tpu.dot_dimension_numbers<[1], [0], [0], [1], [0, 0, 1, 1], [], []>} : vector<8x48xbf16>, vector<48x64xbf16>, vector<8x64xf32> -> vector<8x64xf32>
    %16 = arith.addf %8, %15 : vector<8x64xf32>
    %c0_i32_15 = arith.constant 0 : i32
    %17 = arith.addi %arg1, %c0_i32_15 : i32
    %c0_16 = arith.constant 0 : index
    %18 = arith.index_cast %17 : i32 to index
    %c2 = arith.constant 2 : index
    %c0_17 = arith.constant 0 : index
    %19 = vector.load %arg2[%c0_16, %18, %c2, %c0_17] : memref<1x12x12x48xbf16, #tpu.memory_space<vmem>>, vector<1x1x8x48xbf16>
    %20 = vector.shape_cast %19 : vector<1x1x8x48xbf16> to vector<8x48xbf16>
    %c0_18 = arith.constant 0 : index
    %c2_19 = arith.constant 2 : index
    %c0_20 = arith.constant 0 : index
    %c0_21 = arith.constant 0 : index
    %21 = vector.load %arg3[%c0_18, %c2_19, %c0_20, %c0_21] : memref<5x5x48x64xbf16, #tpu.memory_space<vmem>>, vector<1x1x48x64xbf16>
    %22 = vector.shape_cast %21 : vector<1x1x48x64xbf16> to vector<48x64xbf16>
    %cst_22 = arith.constant dense<0.000000e+00> : vector<8x64xf32>
    %23 = tpu.matmul %20, %22, %cst_22 {dimension_numbers = #tpu.dot_dimension_numbers<[1], [0], [0], [1], [0, 0, 1, 1], [], []>} : vector<8x48xbf16>, vector<48x64xbf16>, vector<8x64xf32> -> vector<8x64xf32>
    %24 = arith.addf %16, %23 : vector<8x64xf32>
    %c0_i32_23 = arith.constant 0 : i32
    %25 = arith.addi %arg1, %c0_i32_23 : i32
    %c0_24 = arith.constant 0 : index
    %26 = arith.index_cast %25 : i32 to index
    %c3 = arith.constant 3 : index
    %c0_25 = arith.constant 0 : index
    %27 = vector.load %arg2[%c0_24, %26, %c3, %c0_25] : memref<1x12x12x48xbf16, #tpu.memory_space<vmem>>, vector<1x1x8x48xbf16>
    %28 = vector.shape_cast %27 : vector<1x1x8x48xbf16> to vector<8x48xbf16>
    %c0_26 = arith.constant 0 : index
    %c3_27 = arith.constant 3 : index
    %c0_28 = arith.constant 0 : index
    %c0_29 = arith.constant 0 : index
    %29 = vector.load %arg3[%c0_26, %c3_27, %c0_28, %c0_29] : memref<5x5x48x64xbf16, #tpu.memory_space<vmem>>, vector<1x1x48x64xbf16>
    %30 = vector.shape_cast %29 : vector<1x1x48x64xbf16> to vector<48x64xbf16>
    %cst_30 = arith.constant dense<0.000000e+00> : vector<8x64xf32>
    %31 = tpu.matmul %28, %30, %cst_30 {dimension_numbers = #tpu.dot_dimension_numbers<[1], [0], [0], [1], [0, 0, 1, 1], [], []>} : vector<8x48xbf16>, vector<48x64xbf16>, vector<8x64xf32> -> vector<8x64xf32>
    %32 = arith.addf %24, %31 : vector<8x64xf32>
    %c0_i32_31 = arith.constant 0 : i32
    %33 = arith.addi %arg1, %c0_i32_31 : i32
    %c0_32 = arith.constant 0 : index
    %34 = arith.index_cast %33 : i32 to index
    %c4 = arith.constant 4 : index
    %c0_33 = arith.constant 0 : index
    %35 = vector.load %arg2[%c0_32, %34, %c4, %c0_33] : memref<1x12x12x48xbf16, #tpu.memory_space<vmem>>, vector<1x1x8x48xbf16>
    %36 = vector.shape_cast %35 : vector<1x1x8x48xbf16> to vector<8x48xbf16>
    %c0_34 = arith.constant 0 : index
    %c4_35 = arith.constant 4 : index
    %c0_36 = arith.constant 0 : index
    %c0_37 = arith.constant 0 : index
    %37 = vector.load %arg3[%c0_34, %c4_35, %c0_36, %c0_37] : memref<5x5x48x64xbf16, #tpu.memory_space<vmem>>, vector<1x1x48x64xbf16>
    %38 = vector.shape_cast %37 : vector<1x1x48x64xbf16> to vector<48x64xbf16>
    %cst_38 = arith.constant dense<0.000000e+00> : vector<8x64xf32>
    %39 = tpu.matmul %36, %38, %cst_38 {dimension_numbers = #tpu.dot_dimension_numbers<[1], [0], [0], [1], [0, 0, 1, 1], [], []>} : vector<8x48xbf16>, vector<48x64xbf16>, vector<8x64xf32> -> vector<8x64xf32>
    %40 = arith.addf %32, %39 : vector<8x64xf32>
    %c1_i32 = arith.constant 1 : i32
    %41 = arith.addi %arg1, %c1_i32 : i32
    %c0_39 = arith.constant 0 : index
    %42 = arith.index_cast %41 : i32 to index
    %c0_40 = arith.constant 0 : index
    %c0_41 = arith.constant 0 : index
    %43 = vector.load %arg2[%c0_39, %42, %c0_40, %c0_41] : memref<1x12x12x48xbf16, #tpu.memory_space<vmem>>, vector<1x1x8x48xbf16>
    %44 = vector.shape_cast %43 : vector<1x1x8x48xbf16> to vector<8x48xbf16>
    %c1_42 = arith.constant 1 : index
    %c0_43 = arith.constant 0 : index
    %c0_44 = arith.constant 0 : index
    %c0_45 = arith.constant 0 : index
    %45 = vector.load %arg3[%c1_42, %c0_43, %c0_44, %c0_45] : memref<5x5x48x64xbf16, #tpu.memory_space<vmem>>, vector<1x1x48x64xbf16>
    %46 = vector.shape_cast %45 : vector<1x1x48x64xbf16> to vector<48x64xbf16>
    %cst_46 = arith.constant dense<0.000000e+00> : vector<8x64xf32>
    %47 = tpu.matmul %44, %46, %cst_46 {dimension_numbers = #tpu.dot_dimension_numbers<[1], [0], [0], [1], [0, 0, 1, 1], [], []>} : vector<8x48xbf16>, vector<48x64xbf16>, vector<8x64xf32> -> vector<8x64xf32>
    %48 = arith.addf %40, %47 : vector<8x64xf32>
    %c1_i32_47 = arith.constant 1 : i32
    %49 = arith.addi %arg1, %c1_i32_47 : i32
    %c0_48 = arith.constant 0 : index
    %50 = arith.index_cast %49 : i32 to index
    %c1_49 = arith.constant 1 : index
    %c0_50 = arith.constant 0 : index
    %51 = vector.load %arg2[%c0_48, %50, %c1_49, %c0_50] : memref<1x12x12x48xbf16, #tpu.memory_space<vmem>>, vector<1x1x8x48xbf16>
    %52 = vector.shape_cast %51 : vector<1x1x8x48xbf16> to vector<8x48xbf16>
    %c1_51 = arith.constant 1 : index
    %c1_52 = arith.constant 1 : index
    %c0_53 = arith.constant 0 : index
    %c0_54 = arith.constant 0 : index
    %53 = vector.load %arg3[%c1_51, %c1_52, %c0_53, %c0_54] : memref<5x5x48x64xbf16, #tpu.memory_space<vmem>>, vector<1x1x48x64xbf16>
    %54 = vector.shape_cast %53 : vector<1x1x48x64xbf16> to vector<48x64xbf16>
    %cst_55 = arith.constant dense<0.000000e+00> : vector<8x64xf32>
    %55 = tpu.matmul %52, %54, %cst_55 {dimension_numbers = #tpu.dot_dimension_numbers<[1], [0], [0], [1], [0, 0, 1, 1], [], []>} : vector<8x48xbf16>, vector<48x64xbf16>, vector<8x64xf32> -> vector<8x64xf32>
    %56 = arith.addf %48, %55 : vector<8x64xf32>
    %c1_i32_56 = arith.constant 1 : i32
    %57 = arith.addi %arg1, %c1_i32_56 : i32
    %c0_57 = arith.constant 0 : index
    %58 = arith.index_cast %57 : i32 to index
    %c2_58 = arith.constant 2 : index
    %c0_59 = arith.constant 0 : index
    %59 = vector.load %arg2[%c0_57, %58, %c2_58, %c0_59] : memref<1x12x12x48xbf16, #tpu.memory_space<vmem>>, vector<1x1x8x48xbf16>
    %60 = vector.shape_cast %59 : vector<1x1x8x48xbf16> to vector<8x48xbf16>
    %c1_60 = arith.constant 1 : index
    %c2_61 = arith.constant 2 : index
    %c0_62 = arith.constant 0 : index
    %c0_63 = arith.constant 0 : index
    %61 = vector.load %arg3[%c1_60, %c2_61, %c0_62, %c0_63] : memref<5x5x48x64xbf16, #tpu.memory_space<vmem>>, vector<1x1x48x64xbf16>
    %62 = vector.shape_cast %61 : vector<1x1x48x64xbf16> to vector<48x64xbf16>
    %cst_64 = arith.constant dense<0.000000e+00> : vector<8x64xf32>
    %63 = tpu.matmul %60, %62, %cst_64 {dimension_numbers = #tpu.dot_dimension_numbers<[1], [0], [0], [1], [0, 0, 1, 1], [], []>} : vector<8x48xbf16>, vector<48x64xbf16>, vector<8x64xf32> -> vector<8x64xf32>
    %64 = arith.addf %56, %63 : vector<8x64xf32>
    %c1_i32_65 = arith.constant 1 : i32
    %65 = arith.addi %arg1, %c1_i32_65 : i32
    %c0_66 = arith.constant 0 : index
    %66 = arith.index_cast %65 : i32 to index
    %c3_67 = arith.constant 3 : index
    %c0_68 = arith.constant 0 : index
    %67 = vector.load %arg2[%c0_66, %66, %c3_67, %c0_68] : memref<1x12x12x48xbf16, #tpu.memory_space<vmem>>, vector<1x1x8x48xbf16>
    %68 = vector.shape_cast %67 : vector<1x1x8x48xbf16> to vector<8x48xbf16>
    %c1_69 = arith.constant 1 : index
    %c3_70 = arith.constant 3 : index
    %c0_71 = arith.constant 0 : index
    %c0_72 = arith.constant 0 : index
    %69 = vector.load %arg3[%c1_69, %c3_70, %c0_71, %c0_72] : memref<5x5x48x64xbf16, #tpu.memory_space<vmem>>, vector<1x1x48x64xbf16>
    %70 = vector.shape_cast %69 : vector<1x1x48x64xbf16> to vector<48x64xbf16>
    %cst_73 = arith.constant dense<0.000000e+00> : vector<8x64xf32>
    %71 = tpu.matmul %68, %70, %cst_73 {dimension_numbers = #tpu.dot_dimension_numbers<[1], [0], [0], [1], [0, 0, 1, 1], [], []>} : vector<8x48xbf16>, vector<48x64xbf16>, vector<8x64xf32> -> vector<8x64xf32>
    %72 = arith.addf %64, %71 : vector<8x64xf32>
    %c1_i32_74 = arith.constant 1 : i32
    %73 = arith.addi %arg1, %c1_i32_74 : i32
    %c0_75 = arith.constant 0 : index
    %74 = arith.index_cast %73 : i32 to index
    %c4_76 = arith.constant 4 : index
    %c0_77 = arith.constant 0 : index
    %75 = vector.load %arg2[%c0_75, %74, %c4_76, %c0_77] : memref<1x12x12x48xbf16, #tpu.memory_space<vmem>>, vector<1x1x8x48xbf16>
    %76 = vector.shape_cast %75 : vector<1x1x8x48xbf16> to vector<8x48xbf16>
    %c1_78 = arith.constant 1 : index
    %c4_79 = arith.constant 4 : index
    %c0_80 = arith.constant 0 : index
    %c0_81 = arith.constant 0 : index
    %77 = vector.load %arg3[%c1_78, %c4_79, %c0_80, %c0_81] : memref<5x5x48x64xbf16, #tpu.memory_space<vmem>>, vector<1x1x48x64xbf16>
    %78 = vector.shape_cast %77 : vector<1x1x48x64xbf16> to vector<48x64xbf16>
    %cst_82 = arith.constant dense<0.000000e+00> : vector<8x64xf32>
    %79 = tpu.matmul %76, %78, %cst_82 {dimension_numbers = #tpu.dot_dimension_numbers<[1], [0], [0], [1], [0, 0, 1, 1], [], []>} : vector<8x48xbf16>, vector<48x64xbf16>, vector<8x64xf32> -> vector<8x64xf32>
    %80 = arith.addf %72, %79 : vector<8x64xf32>
    %c2_i32 = arith.constant 2 : i32
    %81 = arith.addi %arg1, %c2_i32 : i32
    %c0_83 = arith.constant 0 : index
    %82 = arith.index_cast %81 : i32 to index
    %c0_84 = arith.constant 0 : index
    %c0_85 = arith.constant 0 : index
    %83 = vector.load %arg2[%c0_83, %82, %c0_84, %c0_85] : memref<1x12x12x48xbf16, #tpu.memory_space<vmem>>, vector<1x1x8x48xbf16>
    %84 = vector.shape_cast %83 : vector<1x1x8x48xbf16> to vector<8x48xbf16>
    %c2_86 = arith.constant 2 : index
    %c0_87 = arith.constant 0 : index
    %c0_88 = arith.constant 0 : index
    %c0_89 = arith.constant 0 : index
    %85 = vector.load %arg3[%c2_86, %c0_87, %c0_88, %c0_89] : memref<5x5x48x64xbf16, #tpu.memory_space<vmem>>, vector<1x1x48x64xbf16>
    %86 = vector.shape_cast %85 : vector<1x1x48x64xbf16> to vector<48x64xbf16>
    %cst_90 = arith.constant dense<0.000000e+00> : vector<8x64xf32>
    %87 = tpu.matmul %84, %86, %cst_90 {dimension_numbers = #tpu.dot_dimension_numbers<[1], [0], [0], [1], [0, 0, 1, 1], [], []>} : vector<8x48xbf16>, vector<48x64xbf16>, vector<8x64xf32> -> vector<8x64xf32>
    %88 = arith.addf %80, %87 : vector<8x64xf32>
    %c2_i32_91 = arith.constant 2 : i32
    %89 = arith.addi %arg1, %c2_i32_91 : i32
    %c0_92 = arith.constant 0 : index
    %90 = arith.index_cast %89 : i32 to index
    %c1_93 = arith.constant 1 : index
    %c0_94 = arith.constant 0 : index
    %91 = vector.load %arg2[%c0_92, %90, %c1_93, %c0_94] : memref<1x12x12x48xbf16, #tpu.memory_space<vmem>>, vector<1x1x8x48xbf16>
    %92 = vector.shape_cast %91 : vector<1x1x8x48xbf16> to vector<8x48xbf16>
    %c2_95 = arith.constant 2 : index
    %c1_96 = arith.constant 1 : index
    %c0_97 = arith.constant 0 : index
    %c0_98 = arith.constant 0 : index
    %93 = vector.load %arg3[%c2_95, %c1_96, %c0_97, %c0_98] : memref<5x5x48x64xbf16, #tpu.memory_space<vmem>>, vector<1x1x48x64xbf16>
    %94 = vector.shape_cast %93 : vector<1x1x48x64xbf16> to vector<48x64xbf16>
    %cst_99 = arith.constant dense<0.000000e+00> : vector<8x64xf32>
    %95 = tpu.matmul %92, %94, %cst_99 {dimension_numbers = #tpu.dot_dimension_numbers<[1], [0], [0], [1], [0, 0, 1, 1], [], []>} : vector<8x48xbf16>, vector<48x64xbf16>, vector<8x64xf32> -> vector<8x64xf32>
    %96 = arith.addf %88, %95 : vector<8x64xf32>
    %c2_i32_100 = arith.constant 2 : i32
    %97 = arith.addi %arg1, %c2_i32_100 : i32
    %c0_101 = arith.constant 0 : index
    %98 = arith.index_cast %97 : i32 to index
    %c2_102 = arith.constant 2 : index
    %c0_103 = arith.constant 0 : index
    %99 = vector.load %arg2[%c0_101, %98, %c2_102, %c0_103] : memref<1x12x12x48xbf16, #tpu.memory_space<vmem>>, vector<1x1x8x48xbf16>
    %100 = vector.shape_cast %99 : vector<1x1x8x48xbf16> to vector<8x48xbf16>
    %c2_104 = arith.constant 2 : index
    %c2_105 = arith.constant 2 : index
    %c0_106 = arith.constant 0 : index
    %c0_107 = arith.constant 0 : index
    %101 = vector.load %arg3[%c2_104, %c2_105, %c0_106, %c0_107] : memref<5x5x48x64xbf16, #tpu.memory_space<vmem>>, vector<1x1x48x64xbf16>
    %102 = vector.shape_cast %101 : vector<1x1x48x64xbf16> to vector<48x64xbf16>
    %cst_108 = arith.constant dense<0.000000e+00> : vector<8x64xf32>
    %103 = tpu.matmul %100, %102, %cst_108 {dimension_numbers = #tpu.dot_dimension_numbers<[1], [0], [0], [1], [0, 0, 1, 1], [], []>} : vector<8x48xbf16>, vector<48x64xbf16>, vector<8x64xf32> -> vector<8x64xf32>
    %104 = arith.addf %96, %103 : vector<8x64xf32>
    %c2_i32_109 = arith.constant 2 : i32
    %105 = arith.addi %arg1, %c2_i32_109 : i32
    %c0_110 = arith.constant 0 : index
    %106 = arith.index_cast %105 : i32 to index
    %c3_111 = arith.constant 3 : index
    %c0_112 = arith.constant 0 : index
    %107 = vector.load %arg2[%c0_110, %106, %c3_111, %c0_112] : memref<1x12x12x48xbf16, #tpu.memory_space<vmem>>, vector<1x1x8x48xbf16>
    %108 = vector.shape_cast %107 : vector<1x1x8x48xbf16> to vector<8x48xbf16>
    %c2_113 = arith.constant 2 : index
    %c3_114 = arith.constant 3 : index
    %c0_115 = arith.constant 0 : index
    %c0_116 = arith.constant 0 : index
    %109 = vector.load %arg3[%c2_113, %c3_114, %c0_115, %c0_116] : memref<5x5x48x64xbf16, #tpu.memory_space<vmem>>, vector<1x1x48x64xbf16>
    %110 = vector.shape_cast %109 : vector<1x1x48x64xbf16> to vector<48x64xbf16>
    %cst_117 = arith.constant dense<0.000000e+00> : vector<8x64xf32>
    %111 = tpu.matmul %108, %110, %cst_117 {dimension_numbers = #tpu.dot_dimension_numbers<[1], [0], [0], [1], [0, 0, 1, 1], [], []>} : vector<8x48xbf16>, vector<48x64xbf16>, vector<8x64xf32> -> vector<8x64xf32>
    %112 = arith.addf %104, %111 : vector<8x64xf32>
    %c2_i32_118 = arith.constant 2 : i32
    %113 = arith.addi %arg1, %c2_i32_118 : i32
    %c0_119 = arith.constant 0 : index
    %114 = arith.index_cast %113 : i32 to index
    %c4_120 = arith.constant 4 : index
    %c0_121 = arith.constant 0 : index
    %115 = vector.load %arg2[%c0_119, %114, %c4_120, %c0_121] : memref<1x12x12x48xbf16, #tpu.memory_space<vmem>>, vector<1x1x8x48xbf16>
    %116 = vector.shape_cast %115 : vector<1x1x8x48xbf16> to vector<8x48xbf16>
    %c2_122 = arith.constant 2 : index
    %c4_123 = arith.constant 4 : index
    %c0_124 = arith.constant 0 : index
    %c0_125 = arith.constant 0 : index
    %117 = vector.load %arg3[%c2_122, %c4_123, %c0_124, %c0_125] : memref<5x5x48x64xbf16, #tpu.memory_space<vmem>>, vector<1x1x48x64xbf16>
    %118 = vector.shape_cast %117 : vector<1x1x48x64xbf16> to vector<48x64xbf16>
    %cst_126 = arith.constant dense<0.000000e+00> : vector<8x64xf32>
    %119 = tpu.matmul %116, %118, %cst_126 {dimension_numbers = #tpu.dot_dimension_numbers<[1], [0], [0], [1], [0, 0, 1, 1], [], []>} : vector<8x48xbf16>, vector<48x64xbf16>, vector<8x64xf32> -> vector<8x64xf32>
    %120 = arith.addf %112, %119 : vector<8x64xf32>
    %c3_i32 = arith.constant 3 : i32
    %121 = arith.addi %arg1, %c3_i32 : i32
    %c0_127 = arith.constant 0 : index
    %122 = arith.index_cast %121 : i32 to index
    %c0_128 = arith.constant 0 : index
    %c0_129 = arith.constant 0 : index
    %123 = vector.load %arg2[%c0_127, %122, %c0_128, %c0_129] : memref<1x12x12x48xbf16, #tpu.memory_space<vmem>>, vector<1x1x8x48xbf16>
    %124 = vector.shape_cast %123 : vector<1x1x8x48xbf16> to vector<8x48xbf16>
    %c3_130 = arith.constant 3 : index
    %c0_131 = arith.constant 0 : index
    %c0_132 = arith.constant 0 : index
    %c0_133 = arith.constant 0 : index
    %125 = vector.load %arg3[%c3_130, %c0_131, %c0_132, %c0_133] : memref<5x5x48x64xbf16, #tpu.memory_space<vmem>>, vector<1x1x48x64xbf16>
    %126 = vector.shape_cast %125 : vector<1x1x48x64xbf16> to vector<48x64xbf16>
    %cst_134 = arith.constant dense<0.000000e+00> : vector<8x64xf32>
    %127 = tpu.matmul %124, %126, %cst_134 {dimension_numbers = #tpu.dot_dimension_numbers<[1], [0], [0], [1], [0, 0, 1, 1], [], []>} : vector<8x48xbf16>, vector<48x64xbf16>, vector<8x64xf32> -> vector<8x64xf32>
    %128 = arith.addf %120, %127 : vector<8x64xf32>
    %c3_i32_135 = arith.constant 3 : i32
    %129 = arith.addi %arg1, %c3_i32_135 : i32
    %c0_136 = arith.constant 0 : index
    %130 = arith.index_cast %129 : i32 to index
    %c1_137 = arith.constant 1 : index
    %c0_138 = arith.constant 0 : index
    %131 = vector.load %arg2[%c0_136, %130, %c1_137, %c0_138] : memref<1x12x12x48xbf16, #tpu.memory_space<vmem>>, vector<1x1x8x48xbf16>
    %132 = vector.shape_cast %131 : vector<1x1x8x48xbf16> to vector<8x48xbf16>
    %c3_139 = arith.constant 3 : index
    %c1_140 = arith.constant 1 : index
    %c0_141 = arith.constant 0 : index
    %c0_142 = arith.constant 0 : index
    %133 = vector.load %arg3[%c3_139, %c1_140, %c0_141, %c0_142] : memref<5x5x48x64xbf16, #tpu.memory_space<vmem>>, vector<1x1x48x64xbf16>
    %134 = vector.shape_cast %133 : vector<1x1x48x64xbf16> to vector<48x64xbf16>
    %cst_143 = arith.constant dense<0.000000e+00> : vector<8x64xf32>
    %135 = tpu.matmul %132, %134, %cst_143 {dimension_numbers = #tpu.dot_dimension_numbers<[1], [0], [0], [1], [0, 0, 1, 1], [], []>} : vector<8x48xbf16>, vector<48x64xbf16>, vector<8x64xf32> -> vector<8x64xf32>
    %136 = arith.addf %128, %135 : vector<8x64xf32>
    %c3_i32_144 = arith.constant 3 : i32
    %137 = arith.addi %arg1, %c3_i32_144 : i32
    %c0_145 = arith.constant 0 : index
    %138 = arith.index_cast %137 : i32 to index
    %c2_146 = arith.constant 2 : index
    %c0_147 = arith.constant 0 : index
    %139 = vector.load %arg2[%c0_145, %138, %c2_146, %c0_147] : memref<1x12x12x48xbf16, #tpu.memory_space<vmem>>, vector<1x1x8x48xbf16>
    %140 = vector.shape_cast %139 : vector<1x1x8x48xbf16> to vector<8x48xbf16>
    %c3_148 = arith.constant 3 : index
    %c2_149 = arith.constant 2 : index
    %c0_150 = arith.constant 0 : index
    %c0_151 = arith.constant 0 : index
    %141 = vector.load %arg3[%c3_148, %c2_149, %c0_150, %c0_151] : memref<5x5x48x64xbf16, #tpu.memory_space<vmem>>, vector<1x1x48x64xbf16>
    %142 = vector.shape_cast %141 : vector<1x1x48x64xbf16> to vector<48x64xbf16>
    %cst_152 = arith.constant dense<0.000000e+00> : vector<8x64xf32>
    %143 = tpu.matmul %140, %142, %cst_152 {dimension_numbers = #tpu.dot_dimension_numbers<[1], [0], [0], [1], [0, 0, 1, 1], [], []>} : vector<8x48xbf16>, vector<48x64xbf16>, vector<8x64xf32> -> vector<8x64xf32>
    %144 = arith.addf %136, %143 : vector<8x64xf32>
    %c3_i32_153 = arith.constant 3 : i32
    %145 = arith.addi %arg1, %c3_i32_153 : i32
    %c0_154 = arith.constant 0 : index
    %146 = arith.index_cast %145 : i32 to index
    %c3_155 = arith.constant 3 : index
    %c0_156 = arith.constant 0 : index
    %147 = vector.load %arg2[%c0_154, %146, %c3_155, %c0_156] : memref<1x12x12x48xbf16, #tpu.memory_space<vmem>>, vector<1x1x8x48xbf16>
    %148 = vector.shape_cast %147 : vector<1x1x8x48xbf16> to vector<8x48xbf16>
    %c3_157 = arith.constant 3 : index
    %c3_158 = arith.constant 3 : index
    %c0_159 = arith.constant 0 : index
    %c0_160 = arith.constant 0 : index
    %149 = vector.load %arg3[%c3_157, %c3_158, %c0_159, %c0_160] : memref<5x5x48x64xbf16, #tpu.memory_space<vmem>>, vector<1x1x48x64xbf16>
    %150 = vector.shape_cast %149 : vector<1x1x48x64xbf16> to vector<48x64xbf16>
    %cst_161 = arith.constant dense<0.000000e+00> : vector<8x64xf32>
    %151 = tpu.matmul %148, %150, %cst_161 {dimension_numbers = #tpu.dot_dimension_numbers<[1], [0], [0], [1], [0, 0, 1, 1], [], []>} : vector<8x48xbf16>, vector<48x64xbf16>, vector<8x64xf32> -> vector<8x64xf32>
    %152 = arith.addf %144, %151 : vector<8x64xf32>
    %c3_i32_162 = arith.constant 3 : i32
    %153 = arith.addi %arg1, %c3_i32_162 : i32
    %c0_163 = arith.constant 0 : index
    %154 = arith.index_cast %153 : i32 to index
    %c4_164 = arith.constant 4 : index
    %c0_165 = arith.constant 0 : index
    %155 = vector.load %arg2[%c0_163, %154, %c4_164, %c0_165] : memref<1x12x12x48xbf16, #tpu.memory_space<vmem>>, vector<1x1x8x48xbf16>
    %156 = vector.shape_cast %155 : vector<1x1x8x48xbf16> to vector<8x48xbf16>
    %c3_166 = arith.constant 3 : index
    %c4_167 = arith.constant 4 : index
    %c0_168 = arith.constant 0 : index
    %c0_169 = arith.constant 0 : index
    %157 = vector.load %arg3[%c3_166, %c4_167, %c0_168, %c0_169] : memref<5x5x48x64xbf16, #tpu.memory_space<vmem>>, vector<1x1x48x64xbf16>
    %158 = vector.shape_cast %157 : vector<1x1x48x64xbf16> to vector<48x64xbf16>
    %cst_170 = arith.constant dense<0.000000e+00> : vector<8x64xf32>
    %159 = tpu.matmul %156, %158, %cst_170 {dimension_numbers = #tpu.dot_dimension_numbers<[1], [0], [0], [1], [0, 0, 1, 1], [], []>} : vector<8x48xbf16>, vector<48x64xbf16>, vector<8x64xf32> -> vector<8x64xf32>
    %160 = arith.addf %152, %159 : vector<8x64xf32>
    %c4_i32 = arith.constant 4 : i32
    %161 = arith.addi %arg1, %c4_i32 : i32
    %c0_171 = arith.constant 0 : index
    %162 = arith.index_cast %161 : i32 to index
    %c0_172 = arith.constant 0 : index
    %c0_173 = arith.constant 0 : index
    %163 = vector.load %arg2[%c0_171, %162, %c0_172, %c0_173] : memref<1x12x12x48xbf16, #tpu.memory_space<vmem>>, vector<1x1x8x48xbf16>
    %164 = vector.shape_cast %163 : vector<1x1x8x48xbf16> to vector<8x48xbf16>
    %c4_174 = arith.constant 4 : index
    %c0_175 = arith.constant 0 : index
    %c0_176 = arith.constant 0 : index
    %c0_177 = arith.constant 0 : index
    %165 = vector.load %arg3[%c4_174, %c0_175, %c0_176, %c0_177] : memref<5x5x48x64xbf16, #tpu.memory_space<vmem>>, vector<1x1x48x64xbf16>
    %166 = vector.shape_cast %165 : vector<1x1x48x64xbf16> to vector<48x64xbf16>
    %cst_178 = arith.constant dense<0.000000e+00> : vector<8x64xf32>
    %167 = tpu.matmul %164, %166, %cst_178 {dimension_numbers = #tpu.dot_dimension_numbers<[1], [0], [0], [1], [0, 0, 1, 1], [], []>} : vector<8x48xbf16>, vector<48x64xbf16>, vector<8x64xf32> -> vector<8x64xf32>
    %168 = arith.addf %160, %167 : vector<8x64xf32>
    %c4_i32_179 = arith.constant 4 : i32
    %169 = arith.addi %arg1, %c4_i32_179 : i32
    %c0_180 = arith.constant 0 : index
    %170 = arith.index_cast %169 : i32 to index
    %c1_181 = arith.constant 1 : index
    %c0_182 = arith.constant 0 : index
    %171 = vector.load %arg2[%c0_180, %170, %c1_181, %c0_182] : memref<1x12x12x48xbf16, #tpu.memory_space<vmem>>, vector<1x1x8x48xbf16>
    %172 = vector.shape_cast %171 : vector<1x1x8x48xbf16> to vector<8x48xbf16>
    %c4_183 = arith.constant 4 : index
    %c1_184 = arith.constant 1 : index
    %c0_185 = arith.constant 0 : index
    %c0_186 = arith.constant 0 : index
    %173 = vector.load %arg3[%c4_183, %c1_184, %c0_185, %c0_186] : memref<5x5x48x64xbf16, #tpu.memory_space<vmem>>, vector<1x1x48x64xbf16>
    %174 = vector.shape_cast %173 : vector<1x1x48x64xbf16> to vector<48x64xbf16>
    %cst_187 = arith.constant dense<0.000000e+00> : vector<8x64xf32>
    %175 = tpu.matmul %172, %174, %cst_187 {dimension_numbers = #tpu.dot_dimension_numbers<[1], [0], [0], [1], [0, 0, 1, 1], [], []>} : vector<8x48xbf16>, vector<48x64xbf16>, vector<8x64xf32> -> vector<8x64xf32>
    %176 = arith.addf %168, %175 : vector<8x64xf32>
    %c4_i32_188 = arith.constant 4 : i32
    %177 = arith.addi %arg1, %c4_i32_188 : i32
    %c0_189 = arith.constant 0 : index
    %178 = arith.index_cast %177 : i32 to index
    %c2_190 = arith.constant 2 : index
    %c0_191 = arith.constant 0 : index
    %179 = vector.load %arg2[%c0_189, %178, %c2_190, %c0_191] : memref<1x12x12x48xbf16, #tpu.memory_space<vmem>>, vector<1x1x8x48xbf16>
    %180 = vector.shape_cast %179 : vector<1x1x8x48xbf16> to vector<8x48xbf16>
    %c4_192 = arith.constant 4 : index
    %c2_193 = arith.constant 2 : index
    %c0_194 = arith.constant 0 : index
    %c0_195 = arith.constant 0 : index
    %181 = vector.load %arg3[%c4_192, %c2_193, %c0_194, %c0_195] : memref<5x5x48x64xbf16, #tpu.memory_space<vmem>>, vector<1x1x48x64xbf16>
    %182 = vector.shape_cast %181 : vector<1x1x48x64xbf16> to vector<48x64xbf16>
    %cst_196 = arith.constant dense<0.000000e+00> : vector<8x64xf32>
    %183 = tpu.matmul %180, %182, %cst_196 {dimension_numbers = #tpu.dot_dimension_numbers<[1], [0], [0], [1], [0, 0, 1, 1], [], []>} : vector<8x48xbf16>, vector<48x64xbf16>, vector<8x64xf32> -> vector<8x64xf32>
    %184 = arith.addf %176, %183 : vector<8x64xf32>
    %c4_i32_197 = arith.constant 4 : i32
    %185 = arith.addi %arg1, %c4_i32_197 : i32
    %c0_198 = arith.constant 0 : index
    %186 = arith.index_cast %185 : i32 to index
    %c3_199 = arith.constant 3 : index
    %c0_200 = arith.constant 0 : index
    %187 = vector.load %arg2[%c0_198, %186, %c3_199, %c0_200] : memref<1x12x12x48xbf16, #tpu.memory_space<vmem>>, vector<1x1x8x48xbf16>
    %188 = vector.shape_cast %187 : vector<1x1x8x48xbf16> to vector<8x48xbf16>
    %c4_201 = arith.constant 4 : index
    %c3_202 = arith.constant 3 : index
    %c0_203 = arith.constant 0 : index
    %c0_204 = arith.constant 0 : index
    %189 = vector.load %arg3[%c4_201, %c3_202, %c0_203, %c0_204] : memref<5x5x48x64xbf16, #tpu.memory_space<vmem>>, vector<1x1x48x64xbf16>
    %190 = vector.shape_cast %189 : vector<1x1x48x64xbf16> to vector<48x64xbf16>
    %cst_205 = arith.constant dense<0.000000e+00> : vector<8x64xf32>
    %191 = tpu.matmul %188, %190, %cst_205 {dimension_numbers = #tpu.dot_dimension_numbers<[1], [0], [0], [1], [0, 0, 1, 1], [], []>} : vector<8x48xbf16>, vector<48x64xbf16>, vector<8x64xf32> -> vector<8x64xf32>
    %192 = arith.addf %184, %191 : vector<8x64xf32>
    %c4_i32_206 = arith.constant 4 : i32
    %193 = arith.addi %arg1, %c4_i32_206 : i32
    %c0_207 = arith.constant 0 : index
    %194 = arith.index_cast %193 : i32 to index
    %c4_208 = arith.constant 4 : index
    %c0_209 = arith.constant 0 : index
    %195 = vector.load %arg2[%c0_207, %194, %c4_208, %c0_209] : memref<1x12x12x48xbf16, #tpu.memory_space<vmem>>, vector<1x1x8x48xbf16>
    %196 = vector.shape_cast %195 : vector<1x1x8x48xbf16> to vector<8x48xbf16>
    %c4_210 = arith.constant 4 : index
    %c4_211 = arith.constant 4 : index
    %c0_212 = arith.constant 0 : index
    %c0_213 = arith.constant 0 : index
    %197 = vector.load %arg3[%c4_210, %c4_211, %c0_212, %c0_213] : memref<5x5x48x64xbf16, #tpu.memory_space<vmem>>, vector<1x1x48x64xbf16>
    %198 = vector.shape_cast %197 : vector<1x1x48x64xbf16> to vector<48x64xbf16>
    %cst_214 = arith.constant dense<0.000000e+00> : vector<8x64xf32>
    %199 = tpu.matmul %196, %198, %cst_214 {dimension_numbers = #tpu.dot_dimension_numbers<[1], [0], [0], [1], [0, 0, 1, 1], [], []>} : vector<8x48xbf16>, vector<48x64xbf16>, vector<8x64xf32> -> vector<8x64xf32>
    %200 = arith.addf %192, %199 : vector<8x64xf32>
    %c0_215 = arith.constant 0 : index
    %c0_216 = arith.constant 0 : index
    %c0_217 = arith.constant 0 : index
    %c0_218 = arith.constant 0 : index
    %201 = vector.load %arg4[%c0_215, %c0_216, %c0_217, %c0_218] : memref<1x1x8x64xf32, #tpu.memory_space<vmem>>, vector<1x1x8x64xf32>
    %202 = vector.shape_cast %201 : vector<1x1x8x64xf32> to vector<8x64xf32>
    %203 = vector.shape_cast %200 : vector<8x64xf32> to vector<1x1x8x64xf32>
    tpu.vector_store %arg4[%c0_215, %c0_216, %c0_217, %c0_218], %203 {strides = array<i32>} : memref<1x1x8x64xf32, #tpu.memory_space<vmem>>, vector<1x1x8x64xf32>,
    return
  }
  func.func @transform_0(%arg0: i32, %arg1: i32) -> (i32, i32, i32, i32) {
    %c0_i32 = arith.constant 0 : i32
    %c0_i32_0 = arith.constant 0 : i32
    %c0_i32_1 = arith.constant 0 : i32
    %c0_i32_2 = arith.constant 0 : i32
    return %arg0, %c0_i32, %c0_i32_0, %c0_i32_1 : i32, i32, i32, i32
  }
  func.func @transform_1(%arg0: i32, %arg1: i32) -> (i32, i32, i32, i32) {
    %c0_i32 = arith.constant 0 : i32
    %c0_i32_0 = arith.constant 0 : i32
    %c0_i32_1 = arith.constant 0 : i32
    %c0_i32_2 = arith.constant 0 : i32
    %c0_i32_3 = arith.constant 0 : i32
    return %c0_i32, %c0_i32_0, %c0_i32_1, %c0_i32_2 : i32, i32, i32, i32
  }
  func.func @transform_2(%arg0: i32, %arg1: i32) -> (i32, i32, i32, i32) {
    %c0_i32 = arith.constant 0 : i32
    %c0_i32_0 = arith.constant 0 : i32
    %c0_i32_1 = arith.constant 0 : i32
    return %arg0, %arg1, %c0_i32, %c0_i32_0 : i32, i32, i32, i32
  }
}

</mosaic_0001>

<bundles_post_ra>
// kernel: convolution_forward.1
= control target key start
LH: loop header
LB: loop body
LE: loop exit
PB: predicated region body
PF: predicated region fallthrough
CT: control target
= control target key end

     0   :  { %s3130_s9 = smov 0   ;;  %s3132_s10 = smov 0   ;;  %s3628_s0 = inlined_call_operand.vmem [shape: bf16[2,12,12,48], index: 0, kind: input, shape index: {}]   ;;  %s3629_s1 = inlined_call_operand.vmem [shape: bf16[5,5,48,64], index: 1, kind: input, shape index: {}]   ;;  %s3630_s2 = inlined_call_operand.vmem [shape: f32[2,8,8,64], index: 2, kind: output, shape index: {}]  }
   0x1   :  { %s3134_s11 = smov 0   ;;  %s3136_s12 = smov 0  }
   0x2   :  { %s3138_s13 = smov 0  }
   0x3 LB: > { %s21_s14 = sadd.s32 1, %s3103_s11  ;;  %s24_s15 = sadd.s32 1, %s3107_s12  ;;  %s3111_s13 = sphi %s3138_s13, %s12_s13   ;;  %s3107_s12 = sphi %s3136_s12, %s3634_s12   ;;  %s3103_s11 = sphi %s3134_s11, %s3633_s11   ;;  %s3099_s10 = sphi %s3132_s10, %s3632_s10   ;;  %s3095_s9 = sphi %s3130_s9, %s3631_s9  }
   0x4   : > { %p22_p0 = scmp.ge.s32.totalorder %s21_s14, 8  ;;  %p2191_p1 = scmp.ge.s32.totalorder %s3111_s13, 1 }
   0x5   : > { %p126_p2 = scmp.lt.s32.totalorder %s3111_s13, 17 }
   0x6   : > { %s3636_s14 = smov (%p22_p0, %s21_s14), 0  ;;  %s3638_s15 = smov (!%p22_p0, %s24_s15), %s3107_s12 }
   0x7   : > { %p127_p3 = pnand %p2191_p1, %p126_p2  ;;  %p26_p4 = scmp.ge.s32.totalorder %s3638_s15, 2 }
   0x8   : > { %v2978_v0 = vld [vmem:[%s3629_s1 + $0x120] sm:$0xff] (!%p127_p3)   ;;  %v3113_v1 = vmov (!%p127_p3), 0.0   ;;  %v2979_v2 = vld [vmem:[%s3629_s1 + $0x18] sm:$0xff] (!%p127_p3)   ;;  %v2980_v3 = vld [vmem:[%s3629_s1 + $0x128] sm:$0xff] (!%p127_p3)   ;;  %vm3114_vm0 = vmmov (!%p127_p3), 0   ;;  %p151_p5 = scmp.lt.s32.totalorder (!%p127_p3), %s3099_s10, 1 }
   0x9   : > { %s3640_s15 = smov (%p26_p4, %s3638_s15), 0  ;;  %130 = sbr.rel (%p127_p3) target bundleno = 385 (0x181), region = 28 }
   0xa   : > { %2712 = vmatprep.subr.bf16.mxu0 (!%p127_p3), %v3113_v1  ;;  %2592 = vmatprep.subr.bf16.mxu1 (!%p127_p3), %v3113_v1  ;;  %v2981_v4 = vld [vmem:[%s3629_s1 + $0x20] sm:$0xff] (!%p127_p3)   ;;  %s2491_s24 = sshll.u32 (!%p127_p3), %s3095_s9, 3  ;;  %v2982_v5 = vld [vmem:[%s3629_s1 + $0x130] sm:$0xff] (!%p127_p3)   ;;  %v2983_v6 = vld [vmem:[%s3629_s1 + $0x28] sm:$0xff] (!%p127_p3)   ;;  %vm213_vm1 = vcmask (!%p127_p3), 392192   ;;  %p158_p6 = scmp.lt.s32.totalorder (!%p127_p3), %s3095_s9, 7 }
   0xb   : > { %2713 = vmatpush3.bf16.msra.mxu0 (!%p127_p3), %v2978_v0  ;;  %2718 = vmatprep.mubr.msk.bf16.mxu0 (!%p127_p3), %vm3114_vm0, %v3113_v1  ;;  %v2988_v11 = vld [vmem:[%s3629_s1 + $0x138] sm:$0xff] (!%p127_p3)   ;;  %v2991_v21 = vld [vmem:[%s3629_s1 + $0x140] sm:$0xff] (!%p127_p3)   ;;  %v2993_v27 = vld [vmem:[%s3629_s1 + $0x148] sm:$0xff] (!%p127_p3)   ;;  %vm2091_vm2 = vcmask (!%p127_p3), 523264  }
   0xc   : > { %2593 = vmatpush3.bf16.msra.mxu1 (!%p127_p3), %v2979_v2  ;;  %2714 = vmatprep.subr.bf16.mxu0 (!%p127_p3), %v3113_v1  ;;  %v2990_v23 = vld [vmem:[%s3629_s1] sm:$0xff] (!%p127_p3)   ;;  %v2992_v28 = vld [vmem:[%s3629_s1 + $0x8] sm:$0xff] (!%p127_p3)   ;;  %v2995_v30 = vld [vmem:[%s3629_s1 + $0x150] sm:$0xff] (!%p127_p3)  }
   0xd   : > { %2594 = vmatprep.subr.bf16.mxu1 (!%p127_p3), %v3113_v1  ;;  %2598 = vmatprep.mubr.msk.bf16.mxu1 (!%p127_p3), %vm3114_vm0, %v3113_v1  ;;  %v2994_v31 = vld [vmem:[%s3629_s1 + $0x10] sm:$0xff] (!%p127_p3)   ;;  %v2997_v33 = vld [vmem:[%s3629_s1 + $0x158] sm:$0xff] (!%p127_p3)   ;;  %v2999_v36 = vld [vmem:[%s3629_s1 + $0x160] sm:$0xff] (!%p127_p3)  }
   0xe   : > { %v2996_v34 = vld [vmem:[%s3629_s1 + $0x30] sm:$0xff] (!%p127_p3)   ;;  %v2998_v37 = vld [vmem:[%s3629_s1 + $0x38] sm:$0xff] (!%p127_p3)   ;;  %v3001_v40 = vld [vmem:[%s3629_s1 + $0x168] sm:$0xff] (!%p127_p3)  }
   0xf   : > { %2715 = vmatpush3.bf16.msra.mxu0 (!%p127_p3), %v2980_v3  ;;  %v3000_v41 = vld [vmem:[%s3629_s1 + $0x40] sm:$0xff] (!%p127_p3)   ;;  %v3005_v44 = vld [vmem:[%s3629_s1 + $0x170] sm:$0xff] (!%p127_p3)   ;;  %v3004_v47 = vld [vmem:[%s3629_s1 + $0x48] sm:$0xff] (!%p127_p3)  }
  0x10   : > { %s3642_s10 = smov (!%p151_p5, %s3099_s10), 1  ;;  %2595 = vmatpush3.bf16.msra.mxu1 %v2981_v4  ;;  %2716 = vmatprep.subr.bf16.mxu0 %v3113_v1  ;;  %v3007_v48 = vld [vmem:[%s3629_s1 + $0x178] sm:$0xff]   ;;  %v3006_v53 = vld [vmem:[%s3629_s1 + $0x50] sm:$0xff]   ;;  %v3009_v56 = vld [vmem:[%s3629_s1 + $0x180] sm:$0xff]   ;;  %s3644_s9 = smov (!%p158_p6, %s3095_s9), 7 }
  0x11   : > { %s2935_s27 = smul.u32 96, %s3642_s10  ;;  %2596 = vmatprep.subr.bf16.mxu1 %v3113_v1  ;;  %v3008_v59 = vld [vmem:[%s3629_s1 + $0x58] sm:$0xff]   ;;  %v3011_v61 = vld [vmem:[%s3629_s1 + $0x188] sm:$0xff]   ;;  %v3010_v63 = vld [vmem:[%s3629_s1 + $0x60] sm:$0xff]  }
  0x12   : > { %v3013_v3 = vld [vmem:[%s3629_s1 + $0x190] sm:$0xff]   ;;  %v3012_v4 = vld [vmem:[%s3629_s1 + $0x68] sm:$0xff]  }
  0x13   : > { %s155_s4 = scalar_lea.vmem %s3628_s0, %s2935_s27  ;;  %2717 = vmatpush3.bf16.msra.mxu0 %v2982_v5 }
  0x14   : > { %s3197_s5 = scalar_lea.vmem %s155_s4, %s2491_s24  ;;  %2597 = vmatpush3.bf16.msra.mxu1 %v2983_v6  ;;  %2722 = vmatprep.subr.bf16.mxu0 %v3113_v1 }
  0x15   : > { %v3200_v7 = vld [vmem:[%s3197_s5 + $0x14] sm:$0x1]  ;;  %v2331_v8 = vld [vmem:[%s3197_s5 + $0x10] sm:$0xe]  ;;  %v168_v12 = vld [vmem:[%s3197_s5] sm:$0xf]  ;;  %2602 = vmatprep.subr.bf16.mxu1 %v3113_v1 }
  0x16   : > { %v2338_v9 = vcombine.low %v2331_v8, %v3200_v7  ;;  %v2343_v10 = vld [vmem:[%s3197_s5 + $0x14] sm:$0x3]  ;;  %v3211_v14 = vld [vmem:[%s3197_s5 + $0x4] sm:$0x1]  ;;  %v2355_v32 = vld [vmem:[%s3197_s5 + $0x10] sm:$0xc] }
  0x17   : > { %v2350_v13 = vcombine.low %v2331_v8, %v2343_v10  ;;  %v2203_v16 = vcombine.low %v168_v12, %v3211_v14  ;;  %v2362_v35 = vcombine.low %v2355_v32, %v2343_v10  ;;  %v318_v38 = vld [vmem:[%s3197_s5] sm:$0xe]  ;;  %v3277_v43 = vld [vmem:[%s3197_s5 + $0x4] sm:$0x3]  ;;  %v2379_v49 = vld [vmem:[%s3197_s5 + $0x18] sm:$0xf] }
  0x18   : > { %v1101_v15 = vrot.slane %v2338_v9, 1  ;;  %v2218_v42 = vcombine.low %v318_v38, %v3211_v14  ;;  %v2229_v46 = vcombine.low %v318_v38, %v3277_v43  ;;  %v3297_v50 = vld [vmem:[%s3197_s5 + $0x1c] sm:$0x1]  ;;  %v2368_v54 = vld [vmem:[%s3197_s5 + $0x18] sm:$0xf]  ;;  %v3014_v10 = vld [vmem:[%s3629_s1 + $0x70] sm:$0xff]  }
  0x19   : > { %v1176_v17 = vshrl.u32 %v2350_v13, 16  ;;  %v1179_v18 = vshll.u32 %v2350_v13, 16  ;;  %v189_v19 = vshrl.u32 %v2203_v16, 16  ;;  %v191_v20 = vshll.u32 %v2203_v16, 16  ;;  %v473_v5 = vld [vmem:[%s3197_s5] sm:$0xc] }
  0x1a   : > { %2719 = vmatmul.mubr.msk.bf16.vlgmr.msra.gmra.mrb[0].mxu0 %vm213_vm1, %v1101_v15  ;;  %v1256_v39 = vrot.slane %v2362_v35, 2  ;;  %v329_v45 = vrot.slane %v2218_v42, 1  ;;  %v404_v51 = vshrl.u32 %v2229_v46, 16  ;;  %v407_v52 = vshll.u32 %v2229_v46, 16  ;;  %v3016_v8 = vld [vmem:[%s3629_s1 + $0x198] sm:$0xff]   ;;  %v3021_v16 = vld [vmem:[%s3629_s1 + $0x1a8] sm:$0xff]  }
  0x1b   : > { %2723 = vmatpush3.bf16.msra.mxu0 %v2988_v11  ;;  %2728 = vmatprep.mubr.msk.bf16.mxu0 %vm3114_vm0, %v3113_v1  ;;  %v193_v22 = vrot.slane %v191_v20, 1  ;;  %v1178_v24 = vrot.slane %v1176_v17, 1  ;;  %v1181_v25 = vrot.slane %v1179_v18, 2  ;;  %v2387_v55 = vcombine.low %v2379_v49, %v3297_v50  ;;  %v3019_v11 = vld [vmem:[%s3629_s1 + $0x1a0] sm:$0xff]   ;;  %v3018_v14 = vld [vmem:[%s3629_s1 + $0x78] sm:$0xff]  }
  0x1c   : > { %2724 = vmatprep.subr.bf16.mxu0 %v3113_v1  ;;  %v406_v57 = vrot.slane %v404_v51, 1  ;;  %v409_v58 = vrot.slane %v407_v52, 2  ;;  %v2240_v9 = vcombine.low %v473_v5, %v3277_v43  ;;  %v3366_v17 = vld [vmem:[%s3197_s5 + $0x1c] sm:$0x3]  ;;  %v3020_v18 = vld [vmem:[%s3629_s1 + $0x80] sm:$0xff]  }
  0x1d   : > { %v194_v26 = vor.u32 %v193_v22, %v189_v19  ;;  %v1182_v29 = vor.u32 %v1181_v25, %v1178_v24  ;;  %v1410_v60 = vshll.u32 %v2387_v55, 16  ;;  %v1408_v0 = vshrl.u32 %v2387_v55, 16  ;;  %v3025_v22 = vld [vmem:[%s3629_s1 + $0x1b0] sm:$0xff]   ;;  %v3386_v24 = vld [vmem:[%s3197_s5 + $0xc] sm:$0x1]  ;;  %v3028_v35 = vld [vmem:[%s3629_s1 + $0x98] sm:$0xff]  }
  0x1e   : > { %v410_v62 = vor.u32 %v409_v58, %v406_v57  ;;  %v484_v13 = vrot.slane %v2240_v9, 2  ;;  %v2416_v42 = vld [vmem:[%s3197_s5 + $0x18] sm:$0xc]  ;;  %v3042_v57 = vld [vmem:[%s3629_s1 + $0xc0] sm:$0xff]   ;;  %v3045_v58 = vld [vmem:[%s3629_s1 + $0x1f0] sm:$0xff]  }
  0x1f   : > { %2725 = vmatpush3.bf16.msra.mxu0 %v2991_v21  ;;  %2599 = vmatmul.mubr.msk.bf16.vlgmr.msra.gmra.mrb[0].mxu1 %vm213_vm1, %v194_v26  ;;  %v1412_v2 = vrot.slane %v1410_v60, 1  ;;  %v3022_v21 = vld [vmem:[%s3629_s1 + $0x88] sm:$0xff]   ;;  %v3036_v46 = vld [vmem:[%s3629_s1 + $0x1d8] sm:$0xff]   ;;  %v3475_v60 = vld [vmem:[%s3197_s5 + $0x24] sm:$0x1] }
  0x20   : > { %2726 = vmatprep.subr.bf16.mxu0 %v3113_v1  ;;  %2603 = vmatpush3.bf16.msra.mxu1 %v2990_v23  ;;  %v2257_v23 = vld [vmem:[%s3197_s5 + $0x8] sm:$0xf]  ;;  %v3037_v52 = vld [vmem:[%s3629_s1 + $0xb8] sm:$0xff]   ;;  %v3049_v9 = vld [vmem:[%s3629_s1 + $0x200] sm:$0xff]  }
  0x21   : > { %2608 = vmatprep.mubr.msk.bf16.mxu1 %vm3114_vm0, %v3113_v1  ;;  %2604 = vmatprep.subr.bf16.mxu1 %v3113_v1  ;;  %v1413_v6 = vor.u32 %v1412_v2, %v1408_v0  ;;  %v2429_v2 = vld [vmem:[%s3197_s5 + $0x20] sm:$0xf] }
  0x23   : > { %2727 = vmatpush3.bf16.msra.mxu0 %v2993_v27  ;;  %v3027_v27 = vld [vmem:[%s3629_s1 + $0x1b8] sm:$0xff]  }
  0x24   : > { %2732 = vmatprep.subr.bf16.mxu0 %v3113_v1  ;;  %2605 = vmatpush3.bf16.msra.mxu1 %v2992_v28  ;;  %v2246_v28 = vld [vmem:[%s3197_s5 + $0x8] sm:$0xf] }
  0x25   : > { %2606 = vmatprep.subr.bf16.mxu1 %v3113_v1 }
  0x26   : > { %2729 = vmatmul.mubr.msk.bf16.vlgmr.msra.gmra.mrb[0].mxu0 %vm213_vm1, %v1182_v29  ;;  %v2265_v29 = vcombine.low %v2257_v23, %v3386_v24 }
  0x27   : > { %2733 = vmatpush3.bf16.msra.mxu0 %v2995_v30  ;;  %2738 = vmatprep.mubr.msk.bf16.mxu0 %vm3114_vm0, %v3113_v1  ;;  %v3026_v30 = vld [vmem:[%s3629_s1 + $0x90] sm:$0xff]  }
  0x28   : > { %2734 = vmatprep.subr.bf16.mxu0 %v3113_v1  ;;  %2607 = vmatpush3.bf16.msra.mxu1 %v2994_v31  ;;  %v636_v38 = vshrl.u32 %v2265_v29, 16 }
  0x29   : > { %2612 = vmatprep.subr.bf16.mxu1 %v3113_v1 }
  0x2b   : > { %2735 = vmatpush3.bf16.msra.mxu0 %v2997_v33  ;;  %2609 = vmatmul.mubr.msk.bf16.vlgmr.msra.gmra.mrb[0].mxu1 %vm213_vm1, %v168_v12  ;;  %v2392_v12 = vld [vmem:[%s3197_s5 + $0x18] sm:$0xe]  ;;  %v3029_v33 = vld [vmem:[%s3629_s1 + $0x1c0] sm:$0xff]  }
  0x2c   : > { %2736 = vmatprep.subr.bf16.mxu0 %v3113_v1  ;;  %2613 = vmatpush3.bf16.msra.mxu1 %v2996_v34  ;;  %v2399_v15 = vcombine.low %v2392_v12, %v3297_v50  ;;  %v2411_v20 = vcombine.low %v2392_v12, %v3366_v17  ;;  %v638_v34 = vshll.u32 %v2265_v29, 16  ;;  %v3039_v50 = vld [vmem:[%s3629_s1 + $0x1e0] sm:$0xff]  }
  0x2d   : > { %2618 = vmatprep.mubr.msk.bf16.mxu1 %vm3114_vm0, %v3113_v1  ;;  %2614 = vmatprep.subr.bf16.mxu1 %v3113_v1 }
  0x2e   : > { %v1487_v19 = vrot.slane %v2399_v15, 1  ;;  %v1562_v25 = vshrl.u32 %v2411_v20, 16  ;;  %v1565_v26 = vshll.u32 %v2411_v20, 16  ;;  %v3050_v15 = vld [vmem:[%s3629_s1 + $0xe0] sm:$0xff]   ;;  %v3052_v20 = vld [vmem:[%s3629_s1 + $0xe8] sm:$0xff]  }
  0x2f   : > { %2737 = vmatpush3.bf16.msra.mxu0 %v2999_v36 }
  0x30   : > { %2742 = vmatprep.subr.bf16.mxu0 %v3113_v1  ;;  %2615 = vmatpush3.bf16.msra.mxu1 %v2998_v37  ;;  %v1564_v31 = vrot.slane %v1562_v25, 1  ;;  %v1567_v32 = vrot.slane %v1565_v26, 2  ;;  %v3031_v37 = vld [vmem:[%s3629_s1 + $0x1c8] sm:$0xff]   ;;  %v3059_v26 = vld [vmem:[%s3629_s1 + $0x220] sm:$0xff]  }
  0x31   : > { %2616 = vmatprep.subr.bf16.mxu1 %v3113_v1 }
  0x32   : > { %2739 = vmatmul.mubr.msk.bf16.vlgmr.msra.gmra.mrb[0].mxu0 %vm213_vm1, %v1256_v39  ;;  %v1568_v36 = vor.u32 %v1567_v32, %v1564_v31  ;;  %v640_v39 = vrot.slane %v638_v34, 1  ;;  %v3063_v31 = vld [vmem:[%s3629_s1 + $0x228] sm:$0xff]   ;;  %v2318_v32 = vld [vmem:[%s3197_s5 + $0x10] sm:$0xf] }
  0x33   : > { %2743 = vmatpush3.bf16.msra.mxu0 %v3001_v40  ;;  %2748 = vmatprep.mubr.msk.bf16.mxu0 %vm3114_vm0, %v3113_v1  ;;  %v3030_v40 = vld [vmem:[%s3629_s1 + $0xa0] sm:$0xff]  }
  0x34   : > { %2744 = vmatprep.subr.bf16.mxu0 %v3113_v1  ;;  %2617 = vmatpush3.bf16.msra.mxu1 %v3000_v41  ;;  %v3034_v41 = vld [vmem:[%s3629_s1 + $0x1d0] sm:$0xff]   ;;  %v641_v43 = vor.u32 %v640_v39, %v636_v38  ;;  %v3064_v39 = vld [vmem:[%s3629_s1 + $0x108] sm:$0xff]  }
  0x35   : > { %2622 = vmatprep.subr.bf16.mxu1 %v3113_v1  ;;  %v2307_v38 = vld [vmem:[%s3197_s5 + $0x10] sm:$0xf] }
  0x37   : > { %2745 = vmatpush3.bf16.msra.mxu0 %v3005_v44  ;;  %2619 = vmatmul.mubr.msk.bf16.vlgmr.msra.gmra.mrb[0].mxu1 %vm213_vm1, %v329_v45  ;;  %v3033_v44 = vld [vmem:[%s3629_s1 + $0xa8] sm:$0xff]   ;;  %v2423_v45 = vcombine.low %v2416_v42, %v3366_v17  ;;  %v3067_v42 = vld [vmem:[%s3629_s1 + $0x238] sm:$0xff]  }
  0x38   : > { %2746 = vmatprep.subr.bf16.mxu0 %v3113_v1  ;;  %2623 = vmatpush3.bf16.msra.mxu1 %v3004_v47  ;;  %v3035_v47 = vld [vmem:[%s3629_s1 + $0xb0] sm:$0xff]  }
  0x39   : > { %2628 = vmatprep.mubr.msk.bf16.mxu1 %vm3114_vm0, %v3113_v1  ;;  %2624 = vmatprep.subr.bf16.mxu1 %v3113_v1  ;;  %v1642_v49 = vrot.slane %v2423_v45, 2  ;;  %v3069_v45 = vld [vmem:[%s3629_s1 + $0x240] sm:$0xff]  }
  0x3b   : > { %2747 = vmatpush3.bf16.msra.mxu0 %v3007_v48  ;;  %v2270_v48 = vld [vmem:[%s3197_s5 + $0x8] sm:$0xe] }
  0x3c   : > { %2752 = vmatprep.subr.bf16.mxu0 %v3113_v1  ;;  %2625 = vmatpush3.bf16.msra.mxu1 %v3006_v53  ;;  %v2277_v51 = vcombine.low %v2270_v48, %v3386_v24  ;;  %v3455_v53 = vld [vmem:[%s3197_s5 + $0xc] sm:$0x3]  ;;  %v3056_v24 = vld [vmem:[%s3629_s1 + $0xf0] sm:$0xff]  }
  0x3d   : > { %2626 = vmatprep.subr.bf16.mxu1 %v3113_v1 }
  0x3e   : > { %2749 = vmatmul.mubr.msk.bf16.vlgmr.msra.gmra.mrb[0].mxu0 %vm213_vm1, %v2368_v54  ;;  %v3043_v54 = vld [vmem:[%s3629_s1 + $0x1e8] sm:$0xff]   ;;  %v715_v55 = vrot.slane %v2277_v51, 1 }
  0x3f   : > { %2753 = vmatpush3.bf16.msra.mxu0 %v3009_v56  ;;  %2758 = vmatprep.mubr.msk.bf16.mxu0 %vm3114_vm0, %v3113_v1  ;;  %v2289_v56 = vcombine.low %v2270_v48, %v3455_v53  ;;  %v3068_v48 = vld [vmem:[%s3629_s1 + $0x118] sm:$0xff]  }
  0x40   : > { %2754 = vmatprep.subr.bf16.mxu0 %v3113_v1  ;;  %2627 = vmatpush3.bf16.msra.mxu1 %v3008_v59  ;;  %v2440_v59 = vld [vmem:[%s3197_s5 + $0x20] sm:$0xf] }
  0x41   : > { %2632 = vmatprep.subr.bf16.mxu1 %v3113_v1  ;;  %v2448_v0 = vcombine.low %v2440_v59, %v3475_v60 }
  0x43   : > { %2755 = vmatpush3.bf16.msra.mxu0 %v3011_v61  ;;  %2629 = vmatmul.mubr.msk.bf16.vlgmr.msra.gmra.mrb[0].mxu1 %vm213_vm1, %v410_v62  ;;  %v790_v61 = vshrl.u32 %v2289_v56, 16  ;;  %v793_v62 = vshll.u32 %v2289_v56, 16  ;;  %v1794_v12 = vshrl.u32 %v2448_v0, 16 }
  0x44   : > { %2756 = vmatprep.subr.bf16.mxu0 %v3113_v1  ;;  %2633 = vmatpush3.bf16.msra.mxu1 %v3010_v63  ;;  %v3044_v63 = vld [vmem:[%s3629_s1 + $0xc8] sm:$0xff]  }
  0x45   : > { %2638 = vmatprep.mubr.msk.bf16.mxu1 %vm3114_vm0, %v3113_v1  ;;  %2634 = vmatprep.subr.bf16.mxu1 %v3113_v1  ;;  %v795_v5 = vrot.slane %v793_v62, 2 }
  0x47   : > { %2757 = vmatpush3.bf16.msra.mxu0 %v3013_v3  ;;  %v3047_v3 = vld [vmem:[%s3629_s1 + $0x1f8] sm:$0xff]  }
  0x48   : > { %2762 = vmatprep.subr.bf16.mxu0 %v3113_v1  ;;  %2635 = vmatpush3.bf16.msra.mxu1 %v3012_v4  ;;  %v792_v4 = vrot.slane %v790_v61, 1 }
  0x49   : > { %2636 = vmatprep.subr.bf16.mxu1 %v3113_v1 }
  0x4a   : > { %2759 = vmatmul.mubr.msk.bf16.vlgmr.msra.gmra.mrb[0].mxu0 %vm213_vm1, %v1413_v6  ;;  %v3046_v6 = vld [vmem:[%s3629_s1 + $0xd0] sm:$0xff]  }
  0x4b   : > { %2763 = vmatpush3.bf16.msra.mxu0 %v3016_v8  ;;  %2768 = vmatprep.mubr.msk.bf16.mxu0 %vm3114_vm0, %v3113_v1  ;;  %v1796_v8 = vshll.u32 %v2448_v0, 16 }
  0x4c   : > { %2764 = vmatprep.subr.bf16.mxu0 %v3113_v1  ;;  %2637 = vmatpush3.bf16.msra.mxu1 %v3014_v10  ;;  %v796_v10 = vor.u32 %v795_v5, %v792_v4 }
  0x4d   : > { %2642 = vmatprep.subr.bf16.mxu1 %v3113_v1 }
  0x4f   : > { %2765 = vmatpush3.bf16.msra.mxu0 %v3019_v11  ;;  %2639 = vmatmul.mubr.msk.bf16.vlgmr.msra.gmra.mrb[0].mxu1 %vm213_vm1, %v484_v13  ;;  %v3048_v11 = vld [vmem:[%s3629_s1 + $0xd8] sm:$0xff]   ;;  %v1798_v13 = vrot.slane %v1796_v8, 1 }
  0x50   : > { %2766 = vmatprep.subr.bf16.mxu0 %v3113_v1  ;;  %2643 = vmatpush3.bf16.msra.mxu1 %v3018_v14  ;;  %v3051_v14 = vld [vmem:[%s3629_s1 + $0x208] sm:$0xff]  }
  0x51   : > { %2648 = vmatprep.mubr.msk.bf16.mxu1 %vm3114_vm0, %v3113_v1  ;;  %2644 = vmatprep.subr.bf16.mxu1 %v3113_v1  ;;  %v1799_v17 = vor.u32 %v1798_v13, %v1794_v12 }
  0x53   : > { %2767 = vmatpush3.bf16.msra.mxu0 %v3021_v16  ;;  %v2294_v16 = vld [vmem:[%s3197_s5 + $0x8] sm:$0xc] }
  0x54   : > { %2772 = vmatprep.subr.bf16.mxu0 %v3113_v1  ;;  %2645 = vmatpush3.bf16.msra.mxu1 %v3020_v18  ;;  %v3054_v18 = vld [vmem:[%s3629_s1 + $0x210] sm:$0xff]  }
  0x55   : > { %2646 = vmatprep.subr.bf16.mxu1 %v3113_v1 }
  0x56   : > { %2769 = vmatmul.mubr.msk.bf16.vlgmr.msra.gmra.mrb[0].mxu0 %vm213_vm1, %v1487_v19  ;;  %v2301_v19 = vcombine.low %v2294_v16, %v3455_v53  ;;  %v3071_v53 = vld [vmem:[%s3629_s1 + $0x250] sm:$0xff]  }
  0x57   : > { %2773 = vmatpush3.bf16.msra.mxu0 %v3025_v22  ;;  %2778 = vmatprep.mubr.msk.bf16.mxu0 %vm3114_vm0, %v3113_v1  ;;  %v2453_v22 = vld [vmem:[%s3197_s5 + $0x20] sm:$0xe] }
  0x58   : > { %2774 = vmatprep.subr.bf16.mxu0 %v3113_v1  ;;  %2647 = vmatpush3.bf16.msra.mxu1 %v3022_v21  ;;  %v3057_v21 = vld [vmem:[%s3629_s1 + $0x218] sm:$0xff]   ;;  %v870_v23 = vrot.slane %v2301_v19, 2  ;;  %v2460_v25 = vcombine.low %v2453_v22, %v3475_v60 }
  0x59   : > { %2652 = vmatprep.subr.bf16.mxu1 %v3113_v1 }
  0x5a   : > { %v1873_v29 = vrot.slane %v2460_v25, 1 }
  0x5b   : > { %2775 = vmatpush3.bf16.msra.mxu0 %v3027_v27  ;;  %2649 = vmatmul.mubr.msk.bf16.vlgmr.msra.gmra.mrb[0].mxu1 %vm213_vm1, %v2246_v28  ;;  %v2465_v27 = vld [vmem:[%s3197_s5 + $0x24] sm:$0x3]  ;;  %v3058_v28 = vld [vmem:[%s3629_s1 + $0xf8] sm:$0xff]  }
  0x5c   : > { %2776 = vmatprep.subr.bf16.mxu0 %v3113_v1  ;;  %2653 = vmatpush3.bf16.msra.mxu1 %v3026_v30  ;;  %v2472_v30 = vcombine.low %v2453_v22, %v2465_v27 }
  0x5d   : > { %2658 = vmatprep.mubr.msk.bf16.mxu1 %vm3114_vm0, %v3113_v1  ;;  %2654 = vmatprep.subr.bf16.mxu1 %v3113_v1 }
  0x5e   : > { %v1948_v34 = vshrl.u32 %v2472_v30, 16 }
  0x5f   : > { %2777 = vmatpush3.bf16.msra.mxu0 %v3029_v33  ;;  %v3060_v33 = vld [vmem:[%s3629_s1 + $0x100] sm:$0xff]  }
  0x60   : > { %2782 = vmatprep.subr.bf16.mxu0 %v3113_v1  ;;  %2655 = vmatpush3.bf16.msra.mxu1 %v3028_v35  ;;  %v1951_v35 = vshll.u32 %v2472_v30, 16 }
  0x61   : > { %2656 = vmatprep.subr.bf16.mxu1 %v3113_v1 }
  0x62   : > { %2779 = vmatmul.mubr.msk.bf16.vlgmr.msra.gmra.mrb[0].mxu0 %vm213_vm1, %v1568_v36  ;;  %v3065_v36 = vld [vmem:[%s3629_s1 + $0x230] sm:$0xff]  }
  0x63   : > { %2783 = vmatpush3.bf16.msra.mxu0 %v3031_v37  ;;  %2788 = vmatprep.mubr.msk.bf16.mxu0 %vm3114_vm0, %v3113_v1  ;;  %v2326_v37 = vcombine.low %v2318_v32, %v3200_v7  ;;  %v3066_v7 = vld [vmem:[%s3629_s1 + $0x110] sm:$0xff]  }
  0x64   : > { %2784 = vmatprep.subr.bf16.mxu0 %v3113_v1  ;;  %2657 = vmatpush3.bf16.msra.mxu1 %v3030_v40  ;;  %v1950_v40 = vrot.slane %v1948_v34, 1 }
  0x65   : > { %2662 = vmatprep.subr.bf16.mxu1 %v3113_v1 }
  0x67   : > { %2785 = vmatpush3.bf16.msra.mxu0 %v3034_v41  ;;  %2659 = vmatmul.mubr.msk.bf16.vlgmr.msra.gmra.mrb[0].mxu1 %vm213_vm1, %v641_v43  ;;  %v1953_v41 = vrot.slane %v1951_v35, 2  ;;  %v1024_v43 = vshll.u32 %v2326_v37, 16 }
  0x68   : > { %2786 = vmatprep.subr.bf16.mxu0 %v3113_v1  ;;  %2663 = vmatpush3.bf16.msra.mxu1 %v3033_v44 }
  0x69   : > { %2668 = vmatprep.mubr.msk.bf16.mxu1 %vm3114_vm0, %v3113_v1  ;;  %2664 = vmatprep.subr.bf16.mxu1 %v3113_v1  ;;  %v1954_v44 = vor.u32 %v1953_v41, %v1950_v40 }
  0x6b   : > { %2787 = vmatpush3.bf16.msra.mxu0 %v3036_v46  ;;  %v1022_v46 = vshrl.u32 %v2326_v37, 16 }
  0x6c   : > { %2792 = vmatprep.subr.bf16.mxu0 %v3113_v1  ;;  %2665 = vmatpush3.bf16.msra.mxu1 %v3035_v47  ;;  %v1026_v47 = vrot.slane %v1024_v43, 1 }
  0x6d   : > { %2666 = vmatprep.subr.bf16.mxu1 %v3113_v1 }
  0x6e   : > { %2789 = vmatmul.mubr.msk.bf16.vlgmr.msra.gmra.mrb[0].mxu0 %vm213_vm1, %v1642_v49  ;;  %v3070_v49 = vld [vmem:[%s3629_s1 + $0x248] sm:$0xff]   ;;  %v1027_v51 = vor.u32 %v1026_v47, %v1022_v46 }
  0x6f   : > { %2793 = vmatpush3.bf16.msra.mxu0 %v3039_v50  ;;  %2798 = vmatprep.mubr.msk.bf16.mxu0 %vm3114_vm0, %v3113_v1  ;;  %v2477_v50 = vld [vmem:[%s3197_s5 + $0x20] sm:$0xc]  ;;  %s2193_s5 = sshll.u32 %s3642_s10, 3 }
  0x70   : > { %2794 = vmatprep.subr.bf16.mxu0 %v3113_v1  ;;  %2667 = vmatpush3.bf16.msra.mxu1 %v3037_v52  ;;  %v2484_v52 = vcombine.low %v2477_v50, %v2465_v27  ;;  %s161_s3 = sadd.s32 %s2193_s5, %s3644_s9 }
  0x71   : > { %2672 = vmatprep.subr.bf16.mxu1 %v3113_v1  ;;  %s2194_s4 = sshll.u32 %s161_s3, 3 }
  0x72   : > { %s163_s8 = scalar_lea.vmem %s3630_s2, %s2194_s4 }
  0x73   : > { %2795 = vmatpush3.bf16.msra.mxu0 %v3043_v54  ;;  %2669 = vmatmul.mubr.msk.bf16.vlgmr.msra.gmra.mrb[0].mxu1 %vm213_vm1, %v715_v55  ;;  %v2028_v54 = vrot.slane %v2484_v52, 2 }
  0x74   : > { %2796 = vmatprep.subr.bf16.mxu0 %v3113_v1  ;;  %2673 = vmatpush3.bf16.msra.mxu1 %v3042_v57 }
  0x75   : > { %2678 = vmatprep.mubr.msk.bf16.mxu1 %vm3114_vm0, %v3113_v1  ;;  %2674 = vmatprep.subr.bf16.mxu1 %v3113_v1 }
  0x77   : > { %2797 = vmatpush3.bf16.msra.mxu0 %v3045_v58 }
  0x78   : > { %2802 = vmatprep.subr.bf16.mxu0 %v3113_v1  ;;  %2675 = vmatpush3.bf16.msra.mxu1 %v3044_v63 }
  0x79   : > { %2676 = vmatprep.subr.bf16.mxu1 %v3113_v1 }
  0x7a   : > { %2799 = vmatmul.mubr.msk.bf16.vlgmr.msra.gmra.mrb[0].mxu0 %vm213_vm1, %v2429_v2 }
  0x7b   : > { %2803 = vmatpush3.bf16.msra.mxu0 %v3047_v3  ;;  %2808 = vmatprep.mubr.msk.bf16.mxu0 %vm3114_vm0, %v3113_v1 }
  0x7c   : > { %2804 = vmatprep.subr.bf16.mxu0 %v3113_v1  ;;  %2677 = vmatpush3.bf16.msra.mxu1 %v3046_v6 }
  0x7d   : > { %2682 = vmatprep.subr.bf16.mxu1 %v3113_v1 }
  0x7f   : > { %2805 = vmatpush3.bf16.msra.mxu0 %v3049_v9  ;;  %2679 = vmatmul.mubr.msk.bf16.vlgmr.msra.gmra.mrb[0].mxu1 %vm213_vm1, %v796_v10 }
  0x80   : > { %2806 = vmatprep.subr.bf16.mxu0 %v3113_v1  ;;  %2683 = vmatpush3.bf16.msra.mxu1 %v3048_v11 }
  0x81   : > { %2688 = vmatprep.mubr.msk.bf16.mxu1 %vm3114_vm0, %v3113_v1  ;;  %2684 = vmatprep.subr.bf16.mxu1 %v3113_v1 }
  0x83   : > { %2807 = vmatpush3.bf16.msra.mxu0 %v3051_v14 }
  0x84   : > { %2812 = vmatprep.subr.bf16.mxu0 %v3113_v1  ;;  %2685 = vmatpush3.bf16.msra.mxu1 %v3050_v15 }
  0x85   : > { %2686 = vmatprep.subr.bf16.mxu1 %v3113_v1 }
  0x86   : > { %2809 = vmatmul.mubr.msk.bf16.vlgmr.msra.gmra.mrb[0].mxu0 %vm213_vm1, %v1799_v17 }
  0x87   : > { %2813 = vmatpush3.bf16.msra.mxu0 %v3054_v18  ;;  %2818 = vmatprep.mubr.msk.bf16.mxu0 %vm3114_vm0, %v3113_v1 }
  0x88   : > { %2814 = vmatprep.subr.bf16.mxu0 %v3113_v1  ;;  %2687 = vmatpush3.bf16.msra.mxu1 %v3052_v20 }
  0x89   : > { %2692 = vmatprep.subr.bf16.mxu1 %v3113_v1 }
  0x8b   : > { %2815 = vmatpush3.bf16.msra.mxu0 %v3057_v21  ;;  %2689 = vmatmul.mubr.msk.bf16.vlgmr.msra.gmra.mrb[0].mxu1 %vm213_vm1, %v870_v23 }
  0x8c   : > { %2816 = vmatprep.subr.bf16.mxu0 %v3113_v1  ;;  %2693 = vmatpush3.bf16.msra.mxu1 %v3056_v24 }
  0x8d   : > { %2698 = vmatprep.mubr.msk.bf16.mxu1 %vm3114_vm0, %v3113_v1  ;;  %2694 = vmatprep.subr.bf16.mxu1 %v3113_v1 }
  0x8f   : > { %2817 = vmatpush3.bf16.msra.mxu0 %v3059_v26 }
  0x90   : > { %2822 = vmatprep.subr.bf16.mxu0 %v3113_v1  ;;  %2695 = vmatpush3.bf16.msra.mxu1 %v3058_v28 }
  0x91   : > { %2696 = vmatprep.subr.bf16.mxu1 %v3113_v1 }
  0x92   : > { %2819 = vmatmul.mubr.msk.bf16.vlgmr.msra.gmra.mrb[0].mxu0 %vm213_vm1, %v1873_v29 }
  0x93   : > { %2823 = vmatpush3.bf16.msra.mxu0 %v3063_v31  ;;  %2828 = vmatprep.mubr.msk.bf16.mxu0 %vm3114_vm0, %v3113_v1 }
  0x94   : > { %2824 = vmatprep.subr.bf16.mxu0 %v3113_v1  ;;  %2697 = vmatpush3.bf16.msra.mxu1 %v3060_v33 }
  0x95   : > { %2702 = vmatprep.subr.bf16.mxu1 %v3113_v1 }
  0x97   : > { %2825 = vmatpush3.bf16.msra.mxu0 %v3065_v36  ;;  %2699 = vmatmul.mubr.msk.bf16.vlgmr.msra.gmra.mrb[0].mxu1 %vm213_vm1, %v2307_v38 }
  0x98   : > { %2826 = vmatprep.subr.bf16.mxu0 %v3113_v1  ;;  %2703 = vmatpush3.bf16.msra.mxu1 %v3064_v39 }
  0x99   : > { %2708 = vmatprep.mubr.msk.bf16.mxu1 %vm3114_vm0, %v3113_v1  ;;  %2704 = vmatprep.subr.bf16.mxu1 %v3113_v1 }
  0x9b   : > { %2827 = vmatpush3.bf16.msra.mxu0 %v3067_v42 }
  0x9c   : > { %2832 = vmatprep.subr.bf16.mxu0 %v3113_v1  ;;  %2705 = vmatpush3.bf16.msra.mxu1 %v3066_v7 }
  0x9d   : > { %2706 = vmatprep.subr.bf16.mxu1 %v3113_v1 }
  0x9e   : > { %2829 = vmatmul.mubr.msk.bf16.vlgmr.msra.gmra.mrb[0].mxu0 %vm213_vm1, %v1954_v44 }
  0x9f   : > { %2833 = vmatpush3.bf16.msra.mxu0 %v3069_v45  ;;  %2838 = vmatprep.mubr.msk.bf16.mxu0 %vm3114_vm0, %v3113_v1 }
  0xa0   : > { %2834 = vmatprep.subr.bf16.mxu0 %v3113_v1  ;;  %2707 = vmatpush3.bf16.msra.mxu1 %v3068_v48 }
  0xa3   : > { %2835 = vmatpush3.bf16.msra.mxu0 %v3070_v49  ;;  %2709 = vmatmul.mubr.msk.bf16.vlgmr.msra.gmra.mrb[0].mxu1 %vm213_vm1, %v1027_v51 }
  0xa4   : > { %2836 = vmatprep.subr.bf16.mxu0 %v3113_v1 }
  0xa7   : > { %2837 = vmatpush3.bf16.msra.mxu0 %v3071_v53 }
  0xaa   : > { %2839 = vmatmul.mubr.msk.bf16.vlgmr.msra.gmra.mrb[0].mxu0 %vm213_vm1, %v2028_v54 }
 0x176   : > { %v1083_v55 = vpop.f32.mrb[0].mxu1 }
 0x177   : > { %v2710_v56 = vpop.f32.mrb[1].mxu1 }
 0x178   : > { %v1086_v57 = vpop.f32.mrb[2].mxu1 }
 0x179   : > { %v2711_v58 = vpop.f32.mrb[3].mxu1 }
 0x17d   : > { %v2084_v59 = vpop.f32.mrb[0].mxu0 }
 0x17e   : > { %v2842_v1 = vadd.f32 %v2084_v59, %v1083_v55  ;;  %v2840_v60 = vpop.f32.mrb[1].mxu0 }
 0x17f   : > { %v2087_v61 = vpop.f32.mrb[2].mxu0 }
 0x180   : > { %2092 = vst.msk [vmem:[%s163_s8] sm:$0xff] %vm2091_vm2, %v2842_v1  ;;  %v2841_v62 = vpop.f32.mrb[3].mxu0 }
 0x181 PF: > { %s12_s13 = sadd.s32 1, %s3111_s13   ;;  %s3631_s9 = smov %s3103_s11 }
 0x182   : > { %p9_p7 = scmp.ge.s32.totalorder %s12_s13, 18   ;;  %s3632_s10 = smov %s3107_s12 }
 0x183   : > { %s3633_s11 = smov %s3636_s14  ;;  %s3634_s12 = smov %s3640_s15 }
 0x184   :  { %11 = sbr.rel (!%p9_p7) target bundleno = 3 (0x3), region = 87 }

</bundles_post_ra>
